<compile_context>
chip_gen: v5e
topology: v5e:2x2
jax: 0.10.0
libtpu: 0.0.40
codegen_flags: <defaults>
</compile_context>

<pallas_src>
import functools

import jax
import jax.numpy as jnp
from jax import lax
from jax.experimental import pallas as pl
from jax.experimental.pallas import tpu as pltpu


def _pick_row_block(R, max_r_block=128):
    """Largest multiple-of-8 divisor of R that is <= max_r_block, else full R."""
    if R <= max_r_block:
        return R
    start = max_r_block - (max_r_block % 8)
    for rb in range(start, 7, -8):
        if R % rb == 0:
            return rb
    return R  # block == full dim is always legal (no row parallelism then)


def _pick_tile_s(r_block, S, itemsize, vmem_budget=12 * 1024 * 1024, max_tile=4096):
    """Largest multiple-of-128 spatial tile such that 2 inputs x 2 buffers fit."""
    if S <= 128:
        return S  # block == full dim is legal even if not a multiple of 128
    cap = max(128, vmem_budget // (4 * r_block * itemsize))
    tile = min(max_tile, cap, S)
    tile = (tile // 128) * 128
    return max(tile, 128)


def _joints_l2_kernel(valid_ref, out_ref, lab_ref, row_ref, acc_ref, *,
                      thres, spatial, tile_s, lane_chunks, needs_mask,
                      chunk_group):
    """Grid: (row blocks [parallel], spatial tiles [arbitrary reduction])."""
    k = pl.program_id(1)

    @pl.when(k == 0)
    def _():
        acc_ref[...] = jnp.zeros_like(acc_ref)

    if lane_chunks == 0:
        # Single tile covering the whole (small, <= 128) spatial extent.
        d = out_ref[...].astype(jnp.float32) - lab_ref[...].astype(jnp.float32)
        acc_ref[...] += d * d
    else:
        rem = spatial % tile_s  # valid lanes inside the (possibly partial) last tile
        rows = acc_ref.shape[0]
        base_col = (lax.broadcasted_iota(jnp.int32, (rows, 128), 1)
                    if needs_mask else None)
        # Process chunk_group 128-lane chunks in registers per VMEM acc update.
        for g0 in range(0, lane_chunks, chunk_group):
            part = None
            for c in range(g0, min(g0 + chunk_group, lane_chunks)):
                sl = pl.ds(c * 128, 128)
                o = out_ref[:, sl].astype(jnp.float32)
                l = lab_ref[:, sl].astype(jnp.float32)
                d = o - l
                sq = d * d
                # Mask only chunks that can overlap the ragged tail of the last tile.
                if needs_mask and (c + 1) * 128 > rem:
                    col = k * tile_s + c * 128 + base_col
                    sq = jnp.where(col < spatial, sq, 0.0)
                part = sq if part is None else part + sq
            acc_ref[...] += part  # one RMW of the lane-wide accumulator per group

    @pl.when(k == pl.num_programs(1) - 1)
    def _():
        # Single cross-lane (XLU) reduce per row block, only in the epilogue.
        row_sum = jnp.sum(acc_ref[...], axis=-1, keepdims=True)        # (Rb, 1)
        w = (valid_ref[...] > thres).astype(jnp.float32)               # gt(valid, thres)
        row_ref[...] = row_sum * (w * (1.0 / float(spatial)))          # mean * weight


def joints_l2_loss(output, valid, label, *, has_ohkm=False, topk=8, thres=0.0,
                   paf_num=0):
    assert output.shape == label.shape
    B, C, H, W = output.shape
    R, S = B * C, H * W

    out_flat = jnp.reshape(output, (R, S))       # keep native dtype through DMA
    lab_flat = jnp.reshape(label, (R, S))
    valid_flat = jnp.reshape(valid, (R, 1)).astype(jnp.float32)

    r_block = _pick_row_block(R)
    tile_s = _pick_tile_s(r_block, S, out_flat.dtype.itemsize)
    num_r = R // r_block if R % r_block == 0 else 1
    num_k = pl.cdiv(S, tile_s)
    needs_mask = (S % tile_s) != 0
    lane_chunks = tile_s // 128 if tile_s % 128 == 0 else 0
    acc_lanes = 128 if lane_chunks else tile_s
    chunk_group = 4 if r_block <= 128 else 1     # bound register-resident group acc

    kernel = functools.partial(
        _joints_l2_kernel, thres=float(thres), spatial=S, tile_s=tile_s,
        lane_chunks=lane_chunks, needs_mask=needs_mask, chunk_group=chunk_group)

    row_loss = pl.pallas_call(
        kernel,
        out_shape=jax.ShapeDtypeStruct((R, 1), jnp.float32),
        grid_spec=pltpu.PrefetchScalarGridSpec(
            num_scalar_prefetch=0,
            grid=(num_r, num_k),
            in_specs=[
                pl.BlockSpec((r_block, 1), lambda r, k: (r, 0)),        # valid
                pl.BlockSpec((r_block, tile_s), lambda r, k: (r, k)),   # output
                pl.BlockSpec((r_block, tile_s), lambda r, k: (r, k)),   # label
            ],
            out_specs=pl.BlockSpec((r_block, 1), lambda r, k: (r, 0)),  # per-row loss
            scratch_shapes=[pltpu.VMEM((r_block, acc_lanes), jnp.float32)],
        ),
        compiler_params=pltpu.CompilerParams(
            dimension_semantics=("parallel", "arbitrary"),
            vmem_limit_bytes=32 * 1024 * 1024,
        ),
    )(valid_flat, out_flat, lab_flat)

    tmp_loss = row_loss.reshape(B, C)   # weighted per-(batch, channel) MSE

    if not has_ohkm:
        return jnp.mean(tmp_loss)

    # TODO(synk): top-k (OHKM) selection has no in-kernel Pallas TPU primitive;
    # it is done in plain JAX on the kernel's tiny (B, C) per-row output.
    if paf_num == 0:
        vals, _ = jax.lax.top_k(tmp_loss, topk)
        return jnp.mean(vals)
    keypoint_num = C - paf_num * 2
    kp_vals, _ = jax.lax.top_k(tmp_loss[:, :keypoint_num], topk)
    paf_vals, _ = jax.lax.top_k(tmp_loss[:, keypoint_num:], topk * 2)
    return jnp.mean(kp_vals) + jnp.mean(paf_vals)


# ---------------------------------------------------------------------------
# Pure-JAX references (correctness only).
# ---------------------------------------------------------------------------
def _per_row(output, valid, label, thres=0.0):
    tmp = jnp.mean((output - label) ** 2, axis=(2, 3))            # (B, C)
    w = (jnp.squeeze(valid, axis=-1) > thres).astype(jnp.float32)
    return tmp * w


def _reference(output, valid, label, thres=0.0):
    return jnp.mean(_per_row(output, valid, label, thres))


def _reference_ohkm(output, valid, label, topk, thres=0.0):
    tmp = _per_row(output, valid, label, thres)
    vals, _ = jax.lax.top_k(tmp, topk)
    return jnp.mean(vals)


def _reference_ohkm_paf(output, valid, label, topk, paf_num, thres=0.0):
    tmp = _per_row(output, valid, label, thres)
    keypoint_num = output.shape[1] - paf_num * 2
    kp, _ = jax.lax.top_k(tmp[:, :keypoint_num], topk)
    paf, _ = jax.lax.top_k(tmp[:, keypoint_num:], topk * 2)
    return jnp.mean(kp) + jnp.mean(paf)


if __name__ == "__main__":
    key = jax.random.PRNGKey(0)
    k1, k2, k3, k4, k5, k6 = jax.random.split(key, 6)

    # Case 1: S divisible by 128.
    B, C, H, W = 2, 4, 16, 16
    output = jax.random.normal(k1, (B, C, H, W), dtype=jnp.float32)
    label = jax.random.normal(k2, (B, C, H, W), dtype=jnp.float32)
    valid = jax.random.uniform(k3, (B, C, 1), dtype=jnp.float32,
                               minval=-0.5, maxval=1.0)

    loss = jax.block_until_ready(joints_l2_loss(output, valid, label))
    ref = _reference(output, valid, label)
    assert jnp.allclose(loss, ref, atol=1e-5, rtol=1e-5), (loss, ref)

    # Case 2: ragged S (255) -> exercises cdiv grid + in-kernel lane masking.
    B2, C2, H2, W2 = 2, 3, 17, 15
    output2 = jax.random.normal(k4, (B2, C2, H2, W2), dtype=jnp.float32)
    label2 = jax.random.normal(k5, (B2, C2, H2, W2), dtype=jnp.float32)
    valid2 = jax.random.uniform(k6, (B2, C2, 1), dtype=jnp.float32,
                                minval=-0.5, maxval=1.0)

    loss2 = jax.block_until_ready(joints_l2_loss(output2, valid2, label2))
    ref2 = _reference(output2, valid2, label2)
    assert jnp.allclose(loss2, ref2, atol=1e-5, rtol=1e-5), (loss2, ref2)

    # Case 3: OHKM path (top-k done in plain JAX on the kernel output).
    loss3 = jax.block_until_ready(
        joints_l2_loss(output, valid, label, has_ohkm=True, topk=2))
    ref3 = _reference_ohkm(output, valid, label, topk=2)
    assert jnp.allclose(loss3, ref3, atol=1e-5, rtol=1e-5), (loss3, ref3)

    # Case 4: OHKM + paf split.
    loss4 = jax.block_until_ready(
        joints_l2_loss(output, valid, label, has_ohkm=True, topk=1, paf_num=1))
    ref4 = _reference_ohkm_paf(output, valid, label, topk=1, paf_num=1)
    assert jnp.allclose(loss4, ref4, atol=1e-5, rtol=1e-5), (loss4, ref4)

    print("KERNEL_OK")
</pallas_src>

<mosaic_0001>
module attributes {stable_mosaic.version = 11 : i64} {
  func.func @_joints_l2_kernel(%arg0: i32, %arg1: i32, %arg2: memref<8x1xf32, #tpu.memory_space<vmem>>, %arg3: memref<8x256xf32, #tpu.memory_space<vmem>>, %arg4: memref<8x256xf32, #tpu.memory_space<vmem>>, %arg5: memref<8x1xf32, #tpu.memory_space<vmem>>, %arg6: memref<8x128xf32, #tpu.memory_space<vmem>>) attributes {dimension_semantics = [#tpu.dimension_semantics<parallel>, #tpu.dimension_semantics<arbitrary>], iteration_bounds = array<i64: 1, 1>, scalar_prefetch = 0 : i64, scratch_operands = 1 : i64, tpu.core_type = #tpu.core_type<tc>, window_params = [{transform_indices = @transform_0, window_bounds = array<i64: 8, 1>}, {transform_indices = @transform_1, window_bounds = array<i64: 8, 256>}, {transform_indices = @transform_2, window_bounds = array<i64: 8, 256>}, {transform_indices = @transform_3, window_bounds = array<i64: 8, 1>}]} {
    %c0_i32 = arith.constant 0 : i32
    %0 = arith.cmpi eq, %arg1, %c0_i32 : i32
    %1 = arith.extui %0 : i1 to i32
    %c0_i32_0 = arith.constant 0 : i32
    %2 = arith.cmpi ne, %1, %c0_i32_0 : i32
    scf.if %2 {
      %cst = arith.constant 0.000000e+00 : f32
      %18 = vector.broadcast %cst : f32 to vector<8x128xf32>
      %c0_13 = arith.constant 0 : index
      %c0_14 = arith.constant 0 : index
      %19 = vector.load %arg6[%c0_13, %c0_14] : memref<8x128xf32, #tpu.memory_space<vmem>>, vector<8x128xf32>
      tpu.vector_store %arg6[%c0_13, %c0_14], %18 {strides = array<i32>} : memref<8x128xf32, #tpu.memory_space<vmem>>, vector<8x128xf32>,
    } else {
    }
    %c0 = arith.constant 0 : index
    %c0_1 = arith.constant 0 : index
    %3 = vector.load %arg3[%c0, %c0_1] : memref<8x256xf32, #tpu.memory_space<vmem>>, vector<8x128xf32>
    %c0_2 = arith.constant 0 : index
    %c0_3 = arith.constant 0 : index
    %4 = vector.load %arg4[%c0_2, %c0_3] : memref<8x256xf32, #tpu.memory_space<vmem>>, vector<8x128xf32>
    %5 = arith.subf %3, %4 : vector<8x128xf32>
    %6 = arith.mulf %5, %5 : vector<8x128xf32>
    %c0_4 = arith.constant 0 : index
    %c128 = arith.constant 128 : index
    %7 = vector.load %arg3[%c0_4, %c128] : memref<8x256xf32, #tpu.memory_space<vmem>>, vector<8x128xf32>
    %c0_5 = arith.constant 0 : index
    %c128_6 = arith.constant 128 : index
    %8 = vector.load %arg4[%c0_5, %c128_6] : memref<8x256xf32, #tpu.memory_space<vmem>>, vector<8x128xf32>
    %9 = arith.subf %7, %8 : vector<8x128xf32>
    %10 = arith.mulf %9, %9 : vector<8x128xf32>
    %11 = arith.addf %6, %10 : vector<8x128xf32>
    %c0_7 = arith.constant 0 : index
    %c0_8 = arith.constant 0 : index
    %12 = vector.load %arg6[%c0_7, %c0_8] : memref<8x128xf32, #tpu.memory_space<vmem>>, vector<8x128xf32>
    %13 = arith.addf %12, %11 : vector<8x128xf32>
    %c0_9 = arith.constant 0 : index
    %c0_10 = arith.constant 0 : index
    %14 = vector.load %arg6[%c0_9, %c0_10] : memref<8x128xf32, #tpu.memory_space<vmem>>, vector<8x128xf32>
    tpu.vector_store %arg6[%c0_9, %c0_10], %13 {strides = array<i32>} : memref<8x128xf32, #tpu.memory_space<vmem>>, vector<8x128xf32>,
    %c0_i32_11 = arith.constant 0 : i32
    %15 = arith.cmpi eq, %arg1, %c0_i32_11 : i32
    %16 = arith.extui %15 : i1 to i32
    %c0_i32_12 = arith.constant 0 : i32
    %17 = arith.cmpi ne, %16, %c0_i32_12 : i32
    scf.if %17 {
      %c0_13 = arith.constant 0 : index
      %c0_14 = arith.constant 0 : index
      %18 = vector.load %arg6[%c0_13, %c0_14] : memref<8x128xf32, #tpu.memory_space<vmem>>, vector<8x128xf32>
      %cst = arith.constant dense<0.000000e+00> : vector<8xf32>
      %19 = vector.multi_reduction <add>, %18, %cst [1] : vector<8x128xf32> to vector<8xf32>
      %20 = vector.shape_cast %19 : vector<8xf32> to vector<8x1xf32>
      %c0_15 = arith.constant 0 : index
      %c0_16 = arith.constant 0 : index
      %21 = vector.load %arg2[%c0_15, %c0_16] : memref<8x1xf32, #tpu.memory_space<vmem>>, vector<8x1xf32>
      %cst_17 = arith.constant 0.000000e+00 : f32
      %22 = vector.broadcast %cst_17 : f32 to vector<8x1xf32>
      %23 = arith.cmpf ogt, %21, %22 : vector<8x1xf32>
      %24 = arith.extui %23 : vector<8x1xi1> to vector<8x1xi32>
      %25 = arith.sitofp %24 : vector<8x1xi32> to vector<8x1xf32>
      %cst_18 = arith.constant 3.906250e-03 : f32
      %26 = vector.broadcast %cst_18 : f32 to vector<8x1xf32>
      %27 = arith.mulf %25, %26 : vector<8x1xf32>
      %28 = arith.mulf %20, %27 : vector<8x1xf32>
      %c0_19 = arith.constant 0 : index
      %c0_20 = arith.constant 0 : index
      %29 = vector.load %arg5[%c0_19, %c0_20] : memref<8x1xf32, #tpu.memory_space<vmem>>, vector<8x1xf32>
      tpu.vector_store %arg5[%c0_19, %c0_20], %28 {strides = array<i32>} : memref<8x1xf32, #tpu.memory_space<vmem>>, vector<8x1xf32>,
    } else {
    }
    return
  }
  func.func @transform_0(%arg0: i32, %arg1: i32) -> (i32, i32) {
    %c0_i32 = arith.constant 0 : i32
    %c0_i32_0 = arith.constant 0 : i32
    return %arg0, %c0_i32 : i32, i32
  }
  func.func @transform_1(%arg0: i32, %arg1: i32) -> (i32, i32) {
    %c0_i32 = arith.constant 0 : i32
    return %arg0, %arg1 : i32, i32
  }
  func.func @transform_2(%arg0: i32, %arg1: i32) -> (i32, i32) {
    %c0_i32 = arith.constant 0 : i32
    return %arg0, %arg1 : i32, i32
  }
  func.func @transform_3(%arg0: i32, %arg1: i32) -> (i32, i32) {
    %c0_i32 = arith.constant 0 : i32
    %c0_i32_0 = arith.constant 0 : i32
    return %arg0, %c0_i32 : i32, i32
  }
}

</mosaic_0001>

<bundles_post_ra>
// kernel: tpu_custom_call.1
= control target key start
LH: loop header
LB: loop body
LE: loop exit
PB: predicated region body
PF: predicated region fallthrough
CT: control target
= control target key end

     0   :  { %8 = vsyncpa [#allocation4], 0  ;;  %s170_s0 = inlined_call_operand.vmem [shape: f32[8,1], index: 0, kind: input, shape index: {}]   ;;  %s171_s1 = inlined_call_operand.hbm [shape: f32[8,256], index: 1, kind: input, shape index: {}]   ;;  %s172_s2 = inlined_call_operand.hbm [shape: f32[8,256], index: 2, kind: input, shape index: {}]   ;;  %s173_s3 = inlined_call_operand.vmem [shape: f32[8,1], index: 3, kind: output, shape index: {}]  }
   0x1   :  { %s17_s14 = sshll.u32 %s171_s1, 4  ;;  %s18_s14 = int_to_ptr.hbm [resolvable:$true] %s17_s14 }
   0x2   :  { %9 = vsyncpa [#allocation6], 0  ;;  %s135_s15 = smov [#allocation3]   ;;  %s28_s19 = sshll.u32 %s172_s2, 4  ;;  %s29_s19 = int_to_ptr.hbm [resolvable:$true] %s28_s19 }
   0x3   :  { %s19_s16 = sshll.u32 %s135_s15, 4  ;;  %s136_s20 = smov [#allocation5]   ;;  %s20_s16 = int_to_ptr.vmem [resolvable:$true] %s19_s16 }
   0x4   :  { %22 = dma.hbm_to_vmem [thread:$0]  %s18_s14, 256, %s20_s16, [#allocation4]  }
   0x5   :  { %s30_s21 = sshll.u32 %s136_s20, 4  ;;  %s31_s21 = int_to_ptr.vmem [resolvable:$true] %s30_s21 }
   0x6   :  { %33 = dma.hbm_to_vmem [thread:$0]  %s29_s19, 256, %s31_s21, [#allocation6]  }
   0x7   :  { %131 = dma.done.wait [#allocation4], 256  }
   0x8   :  { %132 = vsyncadd [#allocation4], 4294967040 }
   0x9   :  { %133 = dma.done.wait [#allocation6], 256  }
   0xa   :  { %134 = vsyncadd [#allocation6], 4294967040  ;;  %v47_v0 = vld [vmem:[#allocation3] sm:$0xff]  ;;  %v48_v1 = vld [vmem:[#allocation5] sm:$0xff]  ;;  %v137_v10 = vmov 0.0   ;;  %vm71_vm1 = vcmask 7168  }
   0xb   :  { %v51_v2 = vld [vmem:[#allocation3 + $0x8] sm:$0xff]  ;;  %v49_v3 = vsub.f32 %v47_v0, %v48_v1  ;;  %v52_v4 = vld [vmem:[#allocation5 + $0x8] sm:$0xff]  ;;  %v65_v9 = vld [vmem:[%s170_s0] sm:$0xff] }
   0xc   :  { %v53_v5 = vsub.f32 %v51_v2, %v52_v4  ;;  %vm66_vm0 = vcmp.gt.f32.partialorder %v65_v9, 0.0 }
   0xd   :  { %v50_v6 = vmul.f32 %v49_v3, %v49_v3  ;;  %v79_v11 = vsel %vm66_vm0, 1.0, %v137_v10 }
   0xe   :  { %v54_v7 = vmul.f32 %v53_v5, %v53_v5  ;;  %v69_v12 = vmul.f32 0.00390625, %v79_v11 }
  0x10   :  { %v55_v8 = vadd.f32 %v54_v7, %v50_v6 }
  0x12   :  { %63 = vadd.xlane.f32.xlu0 %v55_v8 }
  0x85   :  { %v64_v13 = vpop.xlane.xlu0 %63 }
  0x86   :  { %v70_v14 = vmul.f32 %v69_v12, %v64_v13 }
  0x88   :  { %72 = vst.msk [vmem:[%s173_s3] sm:$0xff] %vm71_vm1, %v70_v14 }
  0x89   :  { %77 = vsyncpa [#allocation4], 1 }
  0x8a   :  { %78 = vsyncpa [#allocation6], 1 }

</bundles_post_ra>
